<compile_context>
chip_gen: v7x
topology: tpu7x:2x2x1
jax: 0.10.0
libtpu: 0.0.40
codegen_flags: <defaults>
</compile_context>

<pallas_src>
import functools

import jax
import jax.numpy as jnp
from jax.experimental import pallas as pl
from jax.experimental.pallas import tpu as pltpu


def _round_up(x, m):
    return (x + m - 1) // m * m


def _fused_prenet_kernel(num_layers, *refs):
    """Fused Prenet over one batch tile.

    refs layout: x_ref, (w_ref, mask_ref) * num_layers, o_ref
      x_ref   : [Bt, D0]      bf16
      w_ref_l : [D_{l}, D_{l+1}] bf16 (pre-transposed, zero padded)
      mask_l  : [Bt, D_{l+1}] bf16, values in {0.0, 2.0} (dropout keep*scale)
      o_ref   : [Bt, D_L]     f32
    """
    x_ref = refs[0]
    o_ref = refs[-1]

    h = x_ref[...].astype(jnp.float32)
    for l in range(num_layers):
        w_ref = refs[1 + 2 * l]
        m_ref = refs[2 + 2 * l]
        # Linear (bias=False) on the MXU: bf16 inputs, f32 accumulation.
        z = jnp.dot(h.astype(jnp.bfloat16), w_ref[...],
                    preferred_element_type=jnp.float32)
        # ReLU + pre-scaled dropout mask, in f32 on the VPU.
        h = jnp.maximum(z, 0.0) * m_ref[...].astype(jnp.float32)
    o_ref[...] = h.astype(o_ref.dtype)


def _pick_batch_tile(batch, dims_p, max_tile=1024, vmem_budget=24 * 1024 * 1024):
    """Pick a batch tile that fits a conservative VMEM budget (v7x-safe)."""
    # Per-row bytes of pipelined (double-buffered) activations, masks and output.
    per_row = 2 * dims_p[0] + sum(2 * d for d in dims_p[1:]) + 4 * dims_p[-1]
    per_row *= 2  # double buffering
    # Resident (double-buffered) weights.
    w_bytes = 2 * sum(2 * dims_p[l] * dims_p[l + 1] for l in range(len(dims_p) - 1))
    avail = max(vmem_budget - w_bytes, 1 << 20)
    tile = max(8, min(max_tile, avail // max(per_row, 1)))
    tile = max(8, (tile // 8) * 8)
    return min(tile, _round_up(batch, 8))


def make_dropout_masks(key, batch, out_dims):
    """Per-layer dropout masks (p=0.5, training=True): values {0.0, 2.0}, bf16."""
    masks = []
    for l, dout in enumerate(out_dims):
        k = jax.random.fold_in(key, l)
        keep = jax.random.bernoulli(k, 0.5, (batch, dout))
        masks.append(jnp.where(keep, 2.0, 0.0).astype(jnp.bfloat16))
    return masks


def prenet_forward(x, weights_t, dropout_key=None, masks=None):
    """Fused Prenet forward.

    x         : [B, in_dim] float array
    weights_t : list of [Din_l, Dout_l] arrays (already transposed, bias-free)
    masks     : optional precomputed dropout masks (list of [B, Dout_l], values {0,2});
                if None they are generated from dropout_key.
    Returns   : [B, Dout_last] float32
    """
    B, in_dim = x.shape
    num_layers = len(weights_t)
    dims = [in_dim] + [int(w.shape[1]) for w in weights_t]

    if masks is None:
        masks = make_dropout_masks(dropout_key, B, dims[1:])

    # Lane-dense padding: feature dims -> multiples of 128; batch -> tile multiple.
    dims_p = [_round_up(d, 128) for d in dims]
    b_tile = _pick_batch_tile(B, dims_p)
    B_p = _round_up(max(B, b_tile), b_tile)

    # Pad + cast operands (zero padding is semantically inert end-to-end).
    x_p = jnp.zeros((B_p, dims_p[0]), jnp.bfloat16)
    x_p = x_p.at[:B, :in_dim].set(x.astype(jnp.bfloat16))

    ws_p, ms_p = [], []
    for l in range(num_layers):
        wp = jnp.zeros((dims_p[l], dims_p[l + 1]), jnp.bfloat16)
        wp = wp.at[:dims[l], :dims[l + 1]].set(weights_t[l].astype(jnp.bfloat16))
        ws_p.append(wp)
        mp = jnp.zeros((B_p, dims_p[l + 1]), jnp.bfloat16)
        mp = mp.at[:B, :dims[l + 1]].set(masks[l].astype(jnp.bfloat16))
        ms_p.append(mp)

    grid = (B_p // b_tile,)

    in_specs = [pl.BlockSpec((b_tile, dims_p[0]), lambda i: (i, 0))]
    operands = [x_p]
    for l in range(num_layers):
        # Weights: constant index_map -> VMEM-resident across batch tiles.
        in_specs.append(pl.BlockSpec((dims_p[l], dims_p[l + 1]), lambda i: (0, 0)))
        # Masks: tiled along batch like the activations.
        in_specs.append(pl.BlockSpec((b_tile, dims_p[l + 1]), lambda i: (i, 0)))
        operands.append(ws_p[l])
        operands.append(ms_p[l])

    out_spec = pl.BlockSpec((b_tile, dims_p[-1]), lambda i: (i, 0))

    out_p = pl.pallas_call(
        functools.partial(_fused_prenet_kernel, num_layers),
        out_shape=jax.ShapeDtypeStruct((B_p, dims_p[-1]), jnp.float32),
        grid_spec=pltpu.PrefetchScalarGridSpec(
            num_scalar_prefetch=0,
            grid=grid,
            in_specs=in_specs,
            out_specs=out_spec,
        ),
        compiler_params=pltpu.CompilerParams(
            dimension_semantics=("parallel",),
        ),
    )(*operands)

    return out_p[:B, :dims[-1]]


def make_prenet_params(key, in_dim, sizes):
    """Xavier-uniform-style init of the LinearNorm weights (bias=False),
    returned already transposed to [in, out] for the kernel."""
    in_sizes = [in_dim] + sizes[:-1]
    weights_t = []
    for i, (din, dout) in enumerate(zip(in_sizes, sizes)):
        k = jax.random.fold_in(key, i)
        limit = (6.0 / (din + dout)) ** 0.5  # xavier_uniform, gain=1 (linear)
        w = jax.random.uniform(k, (dout, din), jnp.float32, -limit, limit)
        weights_t.append(w.T)  # [din, dout]
    return weights_t


def prenet_reference(x, weights_t, masks):
    """Pure-JAX f32 reference with the same (pre-scaled) dropout masks."""
    h = x.astype(jnp.float32)
    for w, m in zip(weights_t, masks):
        h = jnp.maximum(h @ w.astype(jnp.float32), 0.0) * m.astype(jnp.float32)
    return h


if __name__ == "__main__":
    key = jax.random.PRNGKey(0)

    # Small, shape-consistent config: 2 FC layers of ReLU units (no bias).
    batch = 8
    in_dim = 32
    sizes = [64, 64]

    x = jax.random.normal(jax.random.fold_in(key, 100), (batch, in_dim), jnp.float32)
    weights_t = make_prenet_params(key, in_dim, sizes)

    mask_key = jax.random.fold_in(key, 1234)
    masks = make_dropout_masks(mask_key, batch, sizes)

    out = prenet_forward(x, weights_t, masks=masks)
    out = jax.block_until_ready(out)

    assert out.shape == (batch, sizes[-1]), out.shape
    assert out.dtype == jnp.float32
    # Dropout zeros + ReLU => all outputs are >= 0.
    assert bool(jnp.all(out >= 0.0))

    # Numerical check vs. f32 reference (bf16 MXU inputs -> loose tolerance).
    ref = prenet_reference(x, weights_t, masks)
    assert bool(jnp.allclose(out, ref, rtol=5e-2, atol=5e-2)), (
        float(jnp.max(jnp.abs(out - ref))))

    print("KERNEL_OK")
</pallas_src>

<mosaic_0001>
module attributes {stable_mosaic.version = 11 : i64} {
  func.func @_fused_prenet_kernel(%arg0: i32, %arg1: memref<8x128xbf16, #tpu.memory_space<vmem>>, %arg2: memref<128x128xbf16, #tpu.memory_space<vmem>>, %arg3: memref<8x128xbf16, #tpu.memory_space<vmem>>, %arg4: memref<128x128xbf16, #tpu.memory_space<vmem>>, %arg5: memref<8x128xbf16, #tpu.memory_space<vmem>>, %arg6: memref<8x128xf32, #tpu.memory_space<vmem>>) attributes {dimension_semantics = [#tpu.dimension_semantics<parallel>], iteration_bounds = array<i64: 1>, scalar_prefetch = 0 : i64, scratch_operands = 0 : i64, tpu.core_type = #tpu.core_type<tc>, window_params = [{transform_indices = @transform_0, window_bounds = array<i64: 8, 128>}, {pipeline_mode = #tpu.pipeline_mode<synchronous>, transform_indices = @transform_1, window_bounds = array<i64: 128, 128>}, {transform_indices = @transform_2, window_bounds = array<i64: 8, 128>}, {pipeline_mode = #tpu.pipeline_mode<synchronous>, transform_indices = @transform_3, window_bounds = array<i64: 128, 128>}, {transform_indices = @transform_4, window_bounds = array<i64: 8, 128>}, {transform_indices = @transform_5, window_bounds = array<i64: 8, 128>}]} {
    %c0 = arith.constant 0 : index
    %c0_0 = arith.constant 0 : index
    %0 = vector.load %arg1[%c0, %c0_0] : memref<8x128xbf16, #tpu.memory_space<vmem>>, vector<8x128xbf16>
    %1 = arith.extf %0 : vector<8x128xbf16> to vector<8x128xf32>
    %2 = arith.truncf %1 : vector<8x128xf32> to vector<8x128xbf16>
    %c0_1 = arith.constant 0 : index
    %c0_2 = arith.constant 0 : index
    %3 = vector.load %arg2[%c0_1, %c0_2] : memref<128x128xbf16, #tpu.memory_space<vmem>>, vector<128x128xbf16>
    %cst = arith.constant dense<0.000000e+00> : vector<8x128xf32>
    %4 = tpu.matmul %2, %3, %cst {dimension_numbers = #tpu.dot_dimension_numbers<[1], [0], [0], [1], [0, 0, 1, 1], [], []>} : vector<8x128xbf16>, vector<128x128xbf16>, vector<8x128xf32> -> vector<8x128xf32>
    %cst_3 = arith.constant 0.000000e+00 : f32
    %5 = vector.broadcast %cst_3 : f32 to vector<8x128xf32>
    %6 = arith.maximumf %4, %5 : vector<8x128xf32>
    %c0_4 = arith.constant 0 : index
    %c0_5 = arith.constant 0 : index
    %7 = vector.load %arg3[%c0_4, %c0_5] : memref<8x128xbf16, #tpu.memory_space<vmem>>, vector<8x128xbf16>
    %8 = arith.extf %7 : vector<8x128xbf16> to vector<8x128xf32>
    %9 = arith.mulf %6, %8 : vector<8x128xf32>
    %10 = arith.truncf %9 : vector<8x128xf32> to vector<8x128xbf16>
    %c0_6 = arith.constant 0 : index
    %c0_7 = arith.constant 0 : index
    %11 = vector.load %arg4[%c0_6, %c0_7] : memref<128x128xbf16, #tpu.memory_space<vmem>>, vector<128x128xbf16>
    %cst_8 = arith.constant dense<0.000000e+00> : vector<8x128xf32>
    %12 = tpu.matmul %10, %11, %cst_8 {dimension_numbers = #tpu.dot_dimension_numbers<[1], [0], [0], [1], [0, 0, 1, 1], [], []>} : vector<8x128xbf16>, vector<128x128xbf16>, vector<8x128xf32> -> vector<8x128xf32>
    %cst_9 = arith.constant 0.000000e+00 : f32
    %13 = vector.broadcast %cst_9 : f32 to vector<8x128xf32>
    %14 = arith.maximumf %12, %13 : vector<8x128xf32>
    %c0_10 = arith.constant 0 : index
    %c0_11 = arith.constant 0 : index
    %15 = vector.load %arg5[%c0_10, %c0_11] : memref<8x128xbf16, #tpu.memory_space<vmem>>, vector<8x128xbf16>
    %16 = arith.extf %15 : vector<8x128xbf16> to vector<8x128xf32>
    %17 = arith.mulf %14, %16 : vector<8x128xf32>
    %c0_12 = arith.constant 0 : index
    %c0_13 = arith.constant 0 : index
    %18 = vector.load %arg6[%c0_12, %c0_13] : memref<8x128xf32, #tpu.memory_space<vmem>>, vector<8x128xf32>
    tpu.vector_store %arg6[%c0_12, %c0_13], %17 {strides = array<i32>} : memref<8x128xf32, #tpu.memory_space<vmem>>, vector<8x128xf32>,
    return
  }
  func.func @transform_0(%arg0: i32) -> (i32, i32) {
    %c0_i32 = arith.constant 0 : i32
    %c0_i32_0 = arith.constant 0 : i32
    return %arg0, %c0_i32 : i32, i32
  }
  func.func @transform_1(%arg0: i32) -> (i32, i32) {
    %c0_i32 = arith.constant 0 : i32
    %c0_i32_0 = arith.constant 0 : i32
    %c0_i32_1 = arith.constant 0 : i32
    return %c0_i32, %c0_i32_0 : i32, i32
  }
  func.func @transform_2(%arg0: i32) -> (i32, i32) {
    %c0_i32 = arith.constant 0 : i32
    %c0_i32_0 = arith.constant 0 : i32
    return %arg0, %c0_i32 : i32, i32
  }
  func.func @transform_3(%arg0: i32) -> (i32, i32) {
    %c0_i32 = arith.constant 0 : i32
    %c0_i32_0 = arith.constant 0 : i32
    %c0_i32_1 = arith.constant 0 : i32
    return %c0_i32, %c0_i32_0 : i32, i32
  }
  func.func @transform_4(%arg0: i32) -> (i32, i32) {
    %c0_i32 = arith.constant 0 : i32
    %c0_i32_0 = arith.constant 0 : i32
    return %arg0, %c0_i32 : i32, i32
  }
  func.func @transform_5(%arg0: i32) -> (i32, i32) {
    %c0_i32 = arith.constant 0 : i32
    %c0_i32_0 = arith.constant 0 : i32
    return %arg0, %c0_i32 : i32, i32
  }
}

</mosaic_0001>

<bundles_post_ra>
// kernel: tpu_custom_call.1
= control target key start
LH: loop header
LB: loop body
LE: loop exit
PB: predicated region body
PF: predicated region fallthrough
CT: control target
= control target key end

     0   :  { %10 = vsyncpa [#allocation3], 0  ;;  %s586_s0 = inlined_call_operand.hbm [shape: bf16[8,128], index: 0, kind: input, shape index: {}]   ;;  %s587_s1 = inlined_call_operand.hbm [shape: bf16[128,128], index: 1, kind: input, shape index: {}]   ;;  %s588_s2 = inlined_call_operand.vmem [shape: bf16[8,128], index: 2, kind: input, shape index: {}]   ;;  %s589_s3 = inlined_call_operand.hbm [shape: bf16[128,128], index: 3, kind: input, shape index: {}]   ;;  %s590_s4 = inlined_call_operand.vmem [shape: bf16[8,128], index: 4, kind: input, shape index: {}]   ;;  %s591_s5 = inlined_call_operand.hbm [shape: f32[8,128], index: 5, kind: output, shape index: {}]  }
   0x1   :  { %11 = vsyncpa [#allocation6], 0 }
   0x2   :  { %12 = vsyncpa [#allocation4], 0  ;;  %s488_s18 = smov [#allocation5]   ;;  %s394_s22 = scalar_lea.hbm %s587_s1, 1024 }
   0x3   :  { %s28_s19 = sshll.u32 %s488_s18, 4  ;;  %p395_p0 = scmp.ne.s32.totalorder %s587_s1, %s394_s22  ;;  %s29_s19 = int_to_ptr.vmem [resolvable:$true] %s28_s19 }
   0x4   :  { %p398_p1 = scmp.lt.u32.totalorder %s394_s22, %s587_s1 }
   0x6   :  { %p400_p2 = pnand %p398_p1, %p395_p0 }
   0x8   :  { %403 = shalt.err (!%p400_p2)
}
   0x9   :  { %s404_s27 = scalar_lea.vmem %s29_s19, 1024  ;;  %p409_p4 = scmp.lt.s32.totalorder %s29_s19, %s29_s19 }
   0xa   :  { %p405_p3 = scmp.ne.s32.totalorder %s29_s19, %s404_s27  ;;  %p410_p5 = scmp.lt.s32.totalorder %s404_s27, %s404_s27 }
   0xc   :  { %p411_p6 = por %p410_p5, %p409_p4 }
   0xe   :  { %p412_p7 = pnand %p411_p6, %p405_p3 }
  0x10   :  { %415 = shalt.err (!%p412_p7)
}
  0x11   :  { %s489_s28 = smov 64   ;;  %s490_s29 = smov 4  }
  0x12   :  { %34 = dma.hbm_to_vmem [thread:$0]  %s587_s1, 1024, %s29_s19, [#allocation6], %s489_s28, %s489_s28, %s490_s29  }
  0x13   :  { %s491_s7 = smov [#allocation2]   ;;  %s492_s9 = smov [#allocation7]  }
  0x14   :  { %s19_s8 = sshll.u32 %s491_s7, 4  ;;  %s42_s10 = sshll.u32 %s492_s9, 4  ;;  %s20_s8 = int_to_ptr.vmem [resolvable:$true] %s19_s8  ;;  %s43_s10 = int_to_ptr.vmem [resolvable:$true] %s42_s10 }
  0x15   :  { %s416_s13 = scalar_lea.hbm %s586_s0, 64 }
  0x16   :  { %p417_p8 = scmp.ne.s32.totalorder %s586_s0, %s416_s13  ;;  %p420_p9 = scmp.lt.u32.totalorder %s416_s13, %s586_s0 }
  0x18   :  { %p422_p10 = pnand %p420_p9, %p417_p8 }
  0x1a   :  { %425 = shalt.err (!%p422_p10)
}
  0x1b   :  { %s426_s1 = scalar_lea.vmem %s20_s8, 64  ;;  %p431_p12 = scmp.lt.s32.totalorder %s20_s8, %s20_s8 }
  0x1c   :  { %p427_p11 = scmp.ne.s32.totalorder %s20_s8, %s426_s1  ;;  %p432_p13 = scmp.lt.s32.totalorder %s426_s1, %s426_s1 }
  0x1e   :  { %p433_p0 = por %p432_p13, %p431_p12 }
  0x20   :  { %p434_p1 = pnand %p433_p0, %p427_p11 }
  0x22   :  { %437 = shalt.err (!%p434_p1)
}
  0x23   :  { %22 = dma.hbm_to_vmem [thread:$0]  %s586_s0, 64, %s20_s8, [#allocation3]  }
  0x24   :  { %s438_s22 = scalar_lea.hbm %s589_s3, 1024 }
  0x25   :  { %p439_p2 = scmp.ne.s32.totalorder %s589_s3, %s438_s22  ;;  %p442_p3 = scmp.lt.u32.totalorder %s438_s22, %s589_s3 }
  0x27   :  { %p444_p4 = pnand %p442_p3, %p439_p2 }
  0x29   :  { %447 = shalt.err (!%p444_p4)
}
  0x2a   :  { %s448_s27 = scalar_lea.vmem %s43_s10, 1024  ;;  %p453_p6 = scmp.lt.s32.totalorder %s43_s10, %s43_s10 }
  0x2b   :  { %p449_p5 = scmp.ne.s32.totalorder %s43_s10, %s448_s27  ;;  %p454_p7 = scmp.lt.s32.totalorder %s448_s27, %s448_s27 }
  0x2d   :  { %p455_p8 = por %p454_p7, %p453_p6 }
  0x2f   :  { %p456_p9 = pnand %p455_p8, %p449_p5 }
  0x31   :  { %459 = shalt.err (!%p456_p9)
}
  0x32   :  { %48 = dma.hbm_to_vmem [thread:$0]  %s589_s3, 1024, %s43_s10, [#allocation6], %s489_s28, %s489_s28, %s490_s29  }
  0x33   :  { %482 = dma.done.wait [#allocation3], 64  }
  0x34   :  { %483 = vsyncadd [#allocation3], 4294967232 }
  0x35   :  { %484 = dma.done.wait [#allocation6], 2048  }
  0x36   :  { %485 = vsyncadd [#allocation6], 4294965248  ;;  %v493_v0 = vmov 0.0   ;;  %vm494_vm0 = vmmov 0   ;;  %v378_v1 = vld [vmem:[#allocation5] sm:$0xff]   ;;  %v379_v2 = vld [vmem:[#allocation5 + $0x8] sm:$0xff]  }
  0x37   :  { %330 = vmatprep.subr.bf16.mxu0 %v493_v0  ;;  %346 = vmatprep.mubr.msk.bf16.mxu0 %vm494_vm0, %v493_v0  ;;  %v380_v3 = vld [vmem:[#allocation5 + $0x10] sm:$0xff]   ;;  %v386_v4 = vld [vmem:[#allocation7] sm:$0xff]   ;;  %v381_v5 = vld [vmem:[#allocation5 + $0x18] sm:$0xff]   ;;  %s495_s7 = smov [#allocation8]  }
  0x38   :  { %350 = vmatprep.subr.bf16.mxu1 %v493_v0  ;;  %366 = vmatprep.mubr.msk.bf16.mxu1 %vm494_vm0, %v493_v0  ;;  %v387_v6 = vld [vmem:[#allocation7 + $0x8] sm:$0xff]   ;;  %v382_v7 = vld [vmem:[#allocation5 + $0x20] sm:$0xff]   ;;  %v388_v8 = vld [vmem:[#allocation7 + $0x10] sm:$0xff]   ;;  %s286_s8 = sshll.u32 %s495_s7, 4  ;;  %s287_s8 = int_to_ptr.vmem [resolvable:$true] %s286_s8 }
  0x39   :  { %331 = vmatpush3.bf16.msra.mxu0 %v378_v1  ;;  %351 = vmatpush3.bf16.msra.mxu1 %v386_v4  ;;  %v383_v9 = vld [vmem:[#allocation5 + $0x28] sm:$0xff]   ;;  %v389_v10 = vld [vmem:[#allocation7 + $0x18] sm:$0xff]   ;;  %v384_v11 = vld [vmem:[#allocation5 + $0x30] sm:$0xff]   ;;  %p465_p11 = scmp.lt.s32.totalorder %s287_s8, %s287_s8 }
  0x3a   :  { %332 = vmatprep.subr.bf16.mxu0 %v493_v0  ;;  %352 = vmatprep.subr.bf16.mxu1 %v493_v0  ;;  %v390_v12 = vld [vmem:[#allocation7 + $0x20] sm:$0xff]   ;;  %v385_v13 = vld [vmem:[#allocation5 + $0x38] sm:$0xff]   ;;  %v391_v14 = vld [vmem:[#allocation7 + $0x28] sm:$0xff]  }
  0x3b   :  { %v61_v15 = vld [vmem:[#allocation2] sm:$0xf]  ;;  %v392_v16 = vld [vmem:[#allocation7 + $0x30] sm:$0xff]  }
  0x3c   :  { %v393_v17 = vld [vmem:[#allocation7 + $0x38] sm:$0xff]  }
  0x3d   :  { %333 = vmatpush3.bf16.msra.mxu0 %v379_v2  ;;  %353 = vmatpush3.bf16.msra.mxu1 %v387_v6  ;;  %v167_v18 = vld [vmem:[%s588_s2] sm:$0xf]  ;;  %s460_s2 = scalar_lea.vmem %s287_s8, 128 }
  0x3e   :  { %334 = vmatprep.subr.bf16.mxu0 %v493_v0  ;;  %354 = vmatprep.subr.bf16.mxu1 %v493_v0  ;;  %v168_v19 = vunpack.c.l.bf16 %v167_v18  ;;  %v276_v27 = vld [vmem:[%s590_s4] sm:$0xf]  ;;  %p461_p10 = scmp.ne.s32.totalorder %s287_s8, %s460_s2  ;;  %p466_p12 = scmp.lt.s32.totalorder %s460_s2, %s460_s2 }
  0x3f   :  { %v277_v28 = vunpack.c.l.bf16 %v276_v27 }
  0x40   :  { %p467_p13 = por %p466_p12, %p465_p11 }
  0x41   :  { %335 = vmatpush3.bf16.msra.mxu0 %v380_v3  ;;  %355 = vmatpush3.bf16.msra.mxu1 %v388_v8 }
  0x42   :  { %336 = vmatprep.subr.bf16.mxu0 %v493_v0  ;;  %356 = vmatprep.subr.bf16.mxu1 %v493_v0  ;;  %p468_p0 = pnand %p467_p13, %p461_p10 }
  0x45   :  { %337 = vmatpush3.bf16.msra.mxu0 %v381_v5  ;;  %357 = vmatpush3.bf16.msra.mxu1 %v389_v10 }
  0x46   :  { %338 = vmatprep.subr.bf16.mxu0 %v493_v0  ;;  %358 = vmatprep.subr.bf16.mxu1 %v493_v0 }
  0x49   :  { %339 = vmatpush3.bf16.msra.mxu0 %v382_v7  ;;  %359 = vmatpush3.bf16.msra.mxu1 %v390_v12 }
  0x4a   :  { %340 = vmatprep.subr.bf16.mxu0 %v493_v0  ;;  %360 = vmatprep.subr.bf16.mxu1 %v493_v0 }
  0x4d   :  { %341 = vmatpush3.bf16.msra.mxu0 %v383_v9  ;;  %361 = vmatpush3.bf16.msra.mxu1 %v391_v14 }
  0x4e   :  { %342 = vmatprep.subr.bf16.mxu0 %v493_v0  ;;  %362 = vmatprep.subr.bf16.mxu1 %v493_v0 }
  0x51   :  { %343 = vmatpush3.bf16.msra.mxu0 %v384_v11  ;;  %363 = vmatpush3.bf16.msra.mxu1 %v392_v16 }
  0x52   :  { %344 = vmatprep.subr.bf16.mxu0 %v493_v0  ;;  %364 = vmatprep.subr.bf16.mxu1 %v493_v0 }
  0x55   :  { %345 = vmatpush3.bf16.msra.mxu0 %v385_v13  ;;  %365 = vmatpush3.bf16.msra.mxu1 %v393_v17 }
  0x58   :  { %347 = vmatmul.mubr.bf16.vlgmr.msra.gmra.mrb[0].mxu0 %v61_v15 }
 0x12b   :  { %v160_v20 = vpop.f32.mrb[0].mxu0 }
 0x12c   :  { %v166_v21 = vmax.f32 %v160_v20, 0.0  ;;  %v348_v22 = vpop.f32.mrb[1].mxu0 }
 0x12d   :  { %v163_v23 = vpop.f32.mrb[2].mxu0 }
 0x12e   :  { %v169_v24 = vmul.f32 %v168_v19, %v166_v21  ;;  %v349_v25 = vpop.f32.mrb[3].mxu0 }
 0x130   :  { %v170_v26 = vpack.c.bf16 %v169_v24, %v169_v24 }
 0x132   :  { %367 = vmatmul.mubr.bf16.vlgmr.msra.gmra.mrb[0].mxu1 %v170_v26 }
 0x205   :  { %v269_v29 = vpop.f32.mrb[0].mxu1 }
 0x206   :  { %v275_v30 = vmax.f32 %v269_v29, 0.0  ;;  %v368_v31 = vpop.f32.mrb[1].mxu1 }
 0x207   :  { %v272_v32 = vpop.f32.mrb[2].mxu1 }
 0x208   :  { %v278_v33 = vmul.f32 %v277_v28, %v275_v30  ;;  %v369_v34 = vpop.f32.mrb[3].mxu1 }
 0x20a   :  { %279 = vst [vmem:[#allocation8] sm:$0xff] %v278_v33 }
 0x20b   :  { %471 = shalt.err (!%p468_p0)
}
 0x20c   :  { %s472_s10 = scalar_lea.hbm %s591_s5, 128 }
 0x20d   :  { %p473_p1 = scmp.ne.s32.totalorder %s591_s5, %s472_s10  ;;  %p476_p2 = scmp.lt.u32.totalorder %s472_s10, %s591_s5 }
 0x20f   :  { %p478_p3 = pnand %p476_p2, %p473_p1 }
 0x211   :  { %481 = shalt.err (!%p478_p3)
}
 0x212   :  { %289 = dma.vmem_to_hbm [thread:$0]  %s287_s8, 128, %s591_s5, [#allocation4]  }
 0x213   :  { %486 = dma.done.wait [#allocation4], 128  }
 0x214   :  { %487 = vsyncadd [#allocation4], 4294967168 }
 0x215   :  { %293 = vsyncpa [#allocation3], 1 }
 0x216   :  { %294 = vsyncpa [#allocation6], 1 }
 0x217   :  { %295 = vsyncpa [#allocation4], 1 }

</bundles_post_ra>
